<compile_context>
chip_gen: v5e
topology: v5e:2x2
jax: 0.10.0
libtpu: 0.0.40
codegen_flags: <defaults>
</compile_context>

<pallas_src>
import functools

import jax
import jax.numpy as jnp
from jax.experimental import pallas as pl
from jax.experimental.pallas import tpu as pltpu

_EPS = 1e-12


def _prompt_kernel(emb_ref, w_ref, out_ref, acc_ref):
    # emb_ref: (tt, tn, D_in) f32   w_ref: (D_in, D_out) f32
    # out_ref: (tn, D_out) f32      acc_ref: (tn, D_out) f32 scratch
    kt = pl.program_id(1)

    @pl.when(kt == 0)
    def _():
        acc_ref[...] = jnp.zeros_like(acc_ref)

    tt, tn, d_in = emb_ref.shape
    d_out = w_ref.shape[1]

    # Fuse the tt per-template matmuls into one long-M MXU call: collapse
    # (tt, tn) -> tt*tn (layout-free: tn is a sublane-tile multiple or the
    # full dim), cast to bf16 at the MXU boundary, f32 accumulation.
    emb = emb_ref[...].reshape(tt * tn, d_in).astype(jnp.bfloat16)
    w = w_ref[...].astype(jnp.bfloat16)
    feats = jnp.dot(emb, w, preferred_element_type=jnp.float32)
    feats = feats.reshape(tt, tn, d_out)

    # encode_text output norm: per-template, per-row L2 normalization.
    inv_norm = jax.lax.rsqrt(
        jnp.sum(feats * feats, axis=-1, keepdims=True) + _EPS)
    feats = feats * inv_norm

    # stack(...).mean(0): the 1/T factor cancels in the final L2 renorm
    # (scale invariance), so only the running sum is accumulated.
    acc_ref[...] += jnp.sum(feats, axis=0)

    @pl.when(kt == pl.num_programs(1) - 1)
    def _():
        acc = acc_ref[...]
        inv = jax.lax.rsqrt(jnp.sum(acc * acc, axis=-1, keepdims=True) + _EPS)
        out_ref[...] = (acc * inv).astype(out_ref.dtype)


def _choose_tiles(T, N, D_in, D_out, out_itemsize, budget_bytes):
    """Pick (tt, tn): template-chunk and noun-tile sizes against a VMEM budget."""

    def step_bytes(tt, tn):
        emb_dma = 2 * tt * tn * D_in * 4          # double-buffered f32 emb tile
        w_dma = 2 * D_in * D_out * 4              # double-buffered f32 W
        out_dma = 2 * tn * D_out * out_itemsize   # double-buffered output tile
        acc = tn * D_out * 4                      # f32 accumulator scratch
        # in-kernel temporaries: bf16 emb + bf16 W + f32 projected feats
        tmp = tt * tn * (D_in * 2 + D_out * 4) + D_in * D_out * 2
        return emb_dma + w_dma + out_dma + acc + tmp

    # N-tile candidates: multiples of 8 dividing N (layout rule), capped at 512
    # (bigger tiles stop paying off); full-N block is always layout-legal.
    cands = sorted({d for d in range(8, N + 1, 8) if N % d == 0}, reverse=True)
    if not cands:
        cands = [N]
    else:
        small = [t for t in cands if t <= 512]
        cands = small if small else [cands[-1]]
        # Prefer >=2 N-steps so the "parallel" axis can shard across v7x's 2 TCs.
        if len(cands) > 1 and cands[0] == N:
            cands = cands[1:] + [N]

    tt_cands = sorted((d for d in range(1, T + 1) if T % d == 0), reverse=True)

    for tn in cands:
        for tt in tt_cands:
            if step_bytes(tt, tn) <= budget_bytes:
                return tt, tn, step_bytes(tt, tn)
    tt, tn = 1, cands[-1]
    return tt, tn, step_bytes(tt, tn)


@functools.partial(jax.jit, static_argnames=("tn", "tt"))
def predefined_prompt_extractor(pooled_embs, w_proj, *, tn=None, tt=None):
    """pooled_embs: (T, N, D_in) float32, w_proj: (D_in, D_out) float32.

    Returns (N, D_out) float32 — mean-over-templates, L2-normalized features.
    """
    T, N, D_in = pooled_embs.shape
    D_out = w_proj.shape[1]
    out_dtype = jnp.float32

    budget = 32 * 1024 * 1024
    auto_tt, auto_tn, est = _choose_tiles(
        T, N, D_in, D_out, jnp.dtype(out_dtype).itemsize, budget)
    tn = auto_tn if tn is None else tn
    tt = auto_tt if tt is None else tt
    assert N % tn == 0 and T % tt == 0, "tile sizes must divide (N, T)"

    # Explicit scoped-VMEM limit: at least 32 MiB (raises v5e's 16 MiB default),
    # with headroom over the estimate, capped safely below v7x's 64 MiB per-TC.
    vmem_limit = min(48 * 1024 * 1024, max(32 * 1024 * 1024, int(est * 1.5)))

    cost = pl.CostEstimate(
        flops=2 * T * N * D_in * D_out,
        transcendentals=(T + 1) * N,                       # per-row rsqrt
        bytes_accessed=(T * N * D_in + D_in * D_out) * 4 + N * D_out * 4,
    )

    return pl.pallas_call(
        _prompt_kernel,
        out_shape=jax.ShapeDtypeStruct((N, D_out), out_dtype),
        grid_spec=pltpu.PrefetchScalarGridSpec(
            num_scalar_prefetch=0,
            grid=(N // tn, T // tt),                        # reduction axis last
            in_specs=[
                pl.BlockSpec((tt, tn, D_in), lambda n, t: (t, n, 0)),
                pl.BlockSpec((D_in, D_out), lambda n, t: (0, 0)),
            ],
            out_specs=pl.BlockSpec((tn, D_out), lambda n, t: (n, 0)),
            scratch_shapes=[pltpu.VMEM((tn, D_out), jnp.float32)],
        ),
        compiler_params=pltpu.CompilerParams(
            dimension_semantics=("parallel", "arbitrary"),
            vmem_limit_bytes=vmem_limit),
        cost_estimate=cost,
    )(pooled_embs, w_proj)


def _reference(pooled_embs, w_proj):
    feats = jnp.einsum("tnd,de->tne", pooled_embs, w_proj)
    feats = feats / jnp.linalg.norm(feats, axis=-1, keepdims=True)
    mean_f = feats.mean(axis=0)
    return mean_f / jnp.linalg.norm(mean_f, axis=-1, keepdims=True)


if __name__ == "__main__":
    # Synthetic setup: 3 templates, 8 nouns, transformer width 128, feature dim 128.
    T, N, D_in, D_out = 3, 8, 128, 128
    key = jax.random.PRNGKey(0)
    k_emb, k_w = jax.random.split(key)
    pooled_embs = jax.random.normal(k_emb, (T, N, D_in), dtype=jnp.float32)
    w_proj = jax.random.normal(k_w, (D_in, D_out), dtype=jnp.float32) / jnp.sqrt(D_in)

    out = predefined_prompt_extractor(pooled_embs, w_proj)
    out = jax.block_until_ready(out)

    ref = _reference(pooled_embs, w_proj)
    assert out.shape == (N, D_out)
    # bf16 matmul inputs (f32 accumulation) vs. pure-f32 reference: loose tol.
    assert jnp.allclose(out, ref, atol=5e-3, rtol=5e-3), "mismatch vs reference"
    print("KERNEL_OK")
</pallas_src>

<mosaic_0001>
module attributes {stable_mosaic.version = 11 : i64} {
  func.func @_prompt_kernel(%arg0: i32, %arg1: i32, %arg2: memref<3x8x128xf32, #tpu.memory_space<vmem>>, %arg3: memref<128x128xf32, #tpu.memory_space<vmem>>, %arg4: memref<8x128xf32, #tpu.memory_space<vmem>>, %arg5: memref<8x128xf32, #tpu.memory_space<vmem>>) attributes {dimension_semantics = [#tpu.dimension_semantics<parallel>, #tpu.dimension_semantics<arbitrary>], iteration_bounds = array<i64: 1, 1>, scalar_prefetch = 0 : i64, scratch_operands = 1 : i64, tpu.core_type = #tpu.core_type<tc>, window_params = [{transform_indices = @transform_0, window_bounds = array<i64: 3, 8, 128>}, {pipeline_mode = #tpu.pipeline_mode<synchronous>, transform_indices = @transform_1, window_bounds = array<i64: 128, 128>}, {transform_indices = @transform_2, window_bounds = array<i64: 8, 128>}]} {
    %c0_i32 = arith.constant 0 : i32
    %0 = arith.cmpi eq, %arg1, %c0_i32 : i32
    %1 = arith.extui %0 : i1 to i32
    %c0_i32_0 = arith.constant 0 : i32
    %2 = arith.cmpi ne, %1, %c0_i32_0 : i32
    scf.if %2 {
      %cst_14 = arith.constant 0.000000e+00 : f32
      %25 = vector.broadcast %cst_14 : f32 to vector<8x128xf32>
      %c0_15 = arith.constant 0 : index
      %c0_16 = arith.constant 0 : index
      %26 = vector.load %arg5[%c0_15, %c0_16] : memref<8x128xf32, #tpu.memory_space<vmem>>, vector<8x128xf32>
      tpu.vector_store %arg5[%c0_15, %c0_16], %25 {strides = array<i32>} : memref<8x128xf32, #tpu.memory_space<vmem>>, vector<8x128xf32>,
    } else {
    }
    %c0 = arith.constant 0 : index
    %c0_1 = arith.constant 0 : index
    %c0_2 = arith.constant 0 : index
    %3 = vector.load %arg2[%c0, %c0_1, %c0_2] : memref<3x8x128xf32, #tpu.memory_space<vmem>>, vector<3x8x128xf32>
    %4 = vector.shape_cast %3 : vector<3x8x128xf32> to vector<24x128xf32>
    %5 = arith.truncf %4 : vector<24x128xf32> to vector<24x128xbf16>
    %c0_3 = arith.constant 0 : index
    %c0_4 = arith.constant 0 : index
    %6 = vector.load %arg3[%c0_3, %c0_4] : memref<128x128xf32, #tpu.memory_space<vmem>>, vector<128x128xf32>
    %7 = arith.truncf %6 : vector<128x128xf32> to vector<128x128xbf16>
    %cst = arith.constant dense<0.000000e+00> : vector<24x128xf32>
    %8 = tpu.matmul %5, %7, %cst {dimension_numbers = #tpu.dot_dimension_numbers<[1], [0], [0], [1], [0, 0, 1, 1], [], []>} : vector<24x128xbf16>, vector<128x128xbf16>, vector<24x128xf32> -> vector<24x128xf32>
    %9 = vector.shape_cast %8 : vector<24x128xf32> to vector<3x8x128xf32>
    %10 = arith.mulf %9, %9 : vector<3x8x128xf32>
    %cst_5 = arith.constant dense<0.000000e+00> : vector<3x8xf32>
    %11 = vector.multi_reduction <add>, %10, %cst_5 [2] : vector<3x8x128xf32> to vector<3x8xf32>
    %12 = vector.shape_cast %11 : vector<3x8xf32> to vector<3x8x1xf32>
    %cst_6 = arith.constant 9.99999996E-13 : f32
    %13 = vector.broadcast %cst_6 : f32 to vector<3x8x1xf32>
    %14 = arith.addf %12, %13 : vector<3x8x1xf32>
    %15 = math.rsqrt %14 : vector<3x8x1xf32>
    %16 = vector.broadcast %15 : vector<3x8x1xf32> to vector<3x8x128xf32>
    %17 = arith.mulf %9, %16 : vector<3x8x128xf32>
    %c0_7 = arith.constant 0 : index
    %c0_8 = arith.constant 0 : index
    %18 = vector.load %arg5[%c0_7, %c0_8] : memref<8x128xf32, #tpu.memory_space<vmem>>, vector<8x128xf32>
    %cst_9 = arith.constant dense<0.000000e+00> : vector<8x128xf32>
    %19 = vector.multi_reduction <add>, %17, %cst_9 [0] : vector<3x8x128xf32> to vector<8x128xf32>
    %20 = arith.addf %18, %19 : vector<8x128xf32>
    %c0_10 = arith.constant 0 : index
    %c0_11 = arith.constant 0 : index
    %21 = vector.load %arg5[%c0_10, %c0_11] : memref<8x128xf32, #tpu.memory_space<vmem>>, vector<8x128xf32>
    tpu.vector_store %arg5[%c0_10, %c0_11], %20 {strides = array<i32>} : memref<8x128xf32, #tpu.memory_space<vmem>>, vector<8x128xf32>,
    %c0_i32_12 = arith.constant 0 : i32
    %22 = arith.cmpi eq, %arg1, %c0_i32_12 : i32
    %23 = arith.extui %22 : i1 to i32
    %c0_i32_13 = arith.constant 0 : i32
    %24 = arith.cmpi ne, %23, %c0_i32_13 : i32
    scf.if %24 {
      %c0_14 = arith.constant 0 : index
      %c0_15 = arith.constant 0 : index
      %25 = vector.load %arg5[%c0_14, %c0_15] : memref<8x128xf32, #tpu.memory_space<vmem>>, vector<8x128xf32>
      %26 = arith.mulf %25, %25 : vector<8x128xf32>
      %cst_16 = arith.constant dense<0.000000e+00> : vector<8xf32>
      %27 = vector.multi_reduction <add>, %26, %cst_16 [1] : vector<8x128xf32> to vector<8xf32>
      %28 = vector.shape_cast %27 : vector<8xf32> to vector<8x1xf32>
      %cst_17 = arith.constant 9.99999996E-13 : f32
      %29 = vector.broadcast %cst_17 : f32 to vector<8x1xf32>
      %30 = arith.addf %28, %29 : vector<8x1xf32>
      %31 = math.rsqrt %30 : vector<8x1xf32>
      %32 = vector.broadcast %31 : vector<8x1xf32> to vector<8x128xf32>
      %33 = arith.mulf %25, %32 : vector<8x128xf32>
      %c0_18 = arith.constant 0 : index
      %c0_19 = arith.constant 0 : index
      %34 = vector.load %arg4[%c0_18, %c0_19] : memref<8x128xf32, #tpu.memory_space<vmem>>, vector<8x128xf32>
      tpu.vector_store %arg4[%c0_18, %c0_19], %33 {strides = array<i32>} : memref<8x128xf32, #tpu.memory_space<vmem>>, vector<8x128xf32>,
    } else {
    }
    return
  }
  func.func @transform_0(%arg0: i32, %arg1: i32) -> (i32, i32, i32) {
    %c0_i32 = arith.constant 0 : i32
    %c0_i32_0 = arith.constant 0 : i32
    return %arg1, %arg0, %c0_i32 : i32, i32, i32
  }
  func.func @transform_1(%arg0: i32, %arg1: i32) -> (i32, i32) {
    %c0_i32 = arith.constant 0 : i32
    %c0_i32_0 = arith.constant 0 : i32
    %c0_i32_1 = arith.constant 0 : i32
    return %c0_i32, %c0_i32_0 : i32, i32
  }
  func.func @transform_2(%arg0: i32, %arg1: i32) -> (i32, i32) {
    %c0_i32 = arith.constant 0 : i32
    %c0_i32_0 = arith.constant 0 : i32
    return %arg0, %c0_i32 : i32, i32
  }
}

</mosaic_0001>

<bundles_post_ra>
// kernel: predefined_prompt_extractor.1
= control target key start
LH: loop header
LB: loop body
LE: loop exit
PB: predicated region body
PF: predicated region fallthrough
CT: control target
= control target key end

     0   :  { %7 = vsyncpa [#allocation4], 0  ;;  %s312_s0 = inlined_call_operand.hbm [shape: f32[3,8,128], index: 0, kind: input, shape index: {}]   ;;  %s313_s1 = inlined_call_operand.hbm [shape: f32[128,128], index: 1, kind: input, shape index: {}]   ;;  %s314_s2 = inlined_call_operand.hbm [shape: f32[8,128], index: 2, kind: output, shape index: {}]  }
   0x1   :  { %8 = vsyncpa [#allocation7], 0 }
   0x2   :  { %9 = vsyncpa [#allocation5], 0  ;;  %s14_s11 = sshll.u32 %s312_s0, 4  ;;  %s283_s12 = smov [#allocation3]   ;;  %s15_s11 = int_to_ptr.hbm [resolvable:$true] %s14_s11 }
   0x3   :  { %s16_s13 = sshll.u32 %s283_s12, 4  ;;  %s27_s16 = sshll.u32 %s313_s1, 4  ;;  %s17_s13 = int_to_ptr.vmem [resolvable:$true] %s16_s13  ;;  %s28_s16 = int_to_ptr.hbm [resolvable:$true] %s27_s16 }
   0x4   :  { %s284_s17 = smov 128   ;;  %s285_s18 = smov 8  }
   0x5   :  { %22 = dma.hbm_to_vmem [thread:$0]  %s15_s11, 384, %s17_s13, [#allocation4], %s284_s17, %s284_s17, %s285_s18  }
   0x6   :  { %s286_s19 = smov [#allocation6]  }
   0x7   :  { %s29_s20 = sshll.u32 %s286_s19, 4  ;;  %s30_s20 = int_to_ptr.vmem [resolvable:$true] %s29_s20 }
   0x8   :  { %35 = dma.hbm_to_vmem [thread:$0]  %s28_s16, 2048, %s30_s20, [#allocation7], %s284_s17, %s284_s17, %s285_s18  }
   0x9   :  { %277 = dma.done.wait [#allocation4], 384  }
   0xa   :  { %278 = vsyncadd [#allocation4], 4294966912 }
   0xb   :  { %279 = dma.done.wait [#allocation7], 2048  }
   0xc   :  { %280 = vsyncadd [#allocation7], 4294965248  ;;  %v68_v0 = vld [vmem:[#allocation6 + $0x70] sm:$0xff]  ;;  %v69_v1 = vld [vmem:[#allocation6 + $0x78] sm:$0xff]  ;;  %s287_s0 = smov [#allocation8]   ;;  %s173_s23 = sshll.u32 %s314_s2, 4  ;;  %s174_s23 = int_to_ptr.hbm [resolvable:$true] %s173_s23 }
   0xd   :  { %v66_v2 = vld [vmem:[#allocation6 + $0x60] sm:$0xff]  ;;  %v77_v3 = vpack.c.bf16 %v69_v1, %v68_v0  ;;  %v67_v4 = vld [vmem:[#allocation6 + $0x68] sm:$0xff]  ;;  %v64_v6 = vld [vmem:[#allocation6 + $0x50] sm:$0xff]  ;;  %s171_s1 = sshll.u32 %s287_s0, 4  ;;  %s172_s1 = int_to_ptr.vmem [resolvable:$true] %s171_s1 }
   0xe   :  { %v76_v5 = vpack.c.bf16 %v67_v4, %v66_v2  ;;  %v65_v7 = vld [vmem:[#allocation6 + $0x58] sm:$0xff]  ;;  %v62_v9 = vld [vmem:[#allocation6 + $0x40] sm:$0xff]  ;;  %v63_v10 = vld [vmem:[#allocation6 + $0x48] sm:$0xff] }
   0xf   :  { %78 = vmatpush.bf16.msra.mxu0 %v77_v3  ;;  %184 = vmatpush.bf16.msra.mxu1 %v77_v3  ;;  %v75_v8 = vpack.c.bf16 %v65_v7, %v64_v6  ;;  %v74_v11 = vpack.c.bf16 %v63_v10, %v62_v9  ;;  %v60_v12 = vld [vmem:[#allocation6 + $0x30] sm:$0xff]  ;;  %v61_v13 = vld [vmem:[#allocation6 + $0x38] sm:$0xff]  ;;  %v58_v15 = vld [vmem:[#allocation6 + $0x20] sm:$0xff] }
  0x10   :  { %v73_v14 = vpack.c.bf16 %v61_v13, %v60_v12  ;;  %v59_v16 = vld [vmem:[#allocation6 + $0x28] sm:$0xff]  ;;  %v56_v18 = vld [vmem:[#allocation6 + $0x10] sm:$0xff]  ;;  %v57_v19 = vld [vmem:[#allocation6 + $0x18] sm:$0xff] }
  0x11   :  { %v72_v17 = vpack.c.bf16 %v59_v16, %v58_v15  ;;  %v71_v20 = vpack.c.bf16 %v57_v19, %v56_v18  ;;  %v54_v21 = vld [vmem:[#allocation6] sm:$0xff]  ;;  %v55_v22 = vld [vmem:[#allocation6 + $0x8] sm:$0xff]  ;;  %v50_v25 = vld [vmem:[#allocation3 + $0x8] sm:$0xff] }
  0x12   :  { %v70_v23 = vpack.c.bf16 %v55_v22, %v54_v21  ;;  %v49_v24 = vld [vmem:[#allocation3] sm:$0xff]  ;;  %v51_v26 = vld [vmem:[#allocation3 + $0x10] sm:$0xff] }
  0x13   :  { %79 = vmatpush.bf16.msra.mxu0 %v76_v5  ;;  %185 = vmatpush.bf16.msra.mxu1 %v76_v5  ;;  %v52_v27 = vpack.c.bf16 %v50_v25, %v49_v24  ;;  %v53_v28 = vpack.c.bf16 %v51_v26, %v51_v26 }
  0x17   :  { %80 = vmatpush.bf16.msra.mxu0 %v75_v8  ;;  %186 = vmatpush.bf16.msra.mxu1 %v75_v8 }
  0x1b   :  { %81 = vmatpush.bf16.msra.mxu0 %v74_v11  ;;  %187 = vmatpush.bf16.msra.mxu1 %v74_v11 }
  0x1f   :  { %82 = vmatpush.bf16.msra.mxu0 %v73_v14  ;;  %188 = vmatpush.bf16.msra.mxu1 %v73_v14 }
  0x23   :  { %83 = vmatpush.bf16.msra.mxu0 %v72_v17  ;;  %189 = vmatpush.bf16.msra.mxu1 %v72_v17 }
  0x27   :  { %84 = vmatpush.bf16.msra.mxu0 %v71_v20  ;;  %190 = vmatpush.bf16.msra.mxu1 %v71_v20 }
  0x2b   :  { %85 = vmatpush.bf16.msra.mxu0 %v70_v23  ;;  %191 = vmatpush.bf16.msra.mxu1 %v70_v23 }
  0x2e   :  { %86 = vmatmul.bf16.vlgmr.msra.gmra.mxu0 %v52_v27  ;;  %91 = vmatmul.bf16.vlgmr.msra.gmra.mxu1 %v53_v28 }
  0xab   :  { %v87_v29 = vpop.f32.mrf.mxu0  ;;  %v92_v30 = vpop.f32.mrf.mxu1 }
  0xac   :  { %v98_v31 = vmul.f32 %v92_v30, %v92_v30  ;;  %v96_v32 = vmul.f32 %v87_v29, %v87_v29 }
  0xae   :  { %103 = vadd.xlane.f32.xlu1 %v98_v31  ;;  %99 = vadd.xlane.f32.xlu0 %v96_v32 }
  0xb3   :  { %v89_v33 = vpop.f32.mrf.mxu0  ;;  %v94_v34 = vpop.f32.mrf.mxu1 }
  0xb4   :  { %v97_v35 = vmul.f32 %v89_v33, %v89_v33 }
  0xb6   :  { %101 = vadd.xlane.f32.xlu0 %v97_v35 }
 0x121   :  { %v104_v36 = vpop.xlane.xlu1 %103  ;;  %v100_v37 = vpop.xlane.xlu0 %99 }
 0x122   :  { %v107_v38 = vadd.f32 1e-12, %v104_v36  ;;  %v105_v39 = vadd.f32 1e-12, %v100_v37 }
 0x124   :  { %197 = vrsqrt.f32 %v107_v38  ;;  %vm134_vm1 = vweird.f32 %v107_v38  ;;  %vm114_vm3 = vweird.f32 %v105_v39 }
 0x125   :  { %199 = vrsqrt.f32 %v105_v39 }
 0x129   :  { %v102_v40 = vpop.xlane.xlu0 %101 }
 0x12a   :  { %v198_v41 = vpop.eup %197  ;;  %v106_v42 = vadd.f32 1e-12, %v102_v40 }
 0x12b   :  { %v200_v43 = vpop.eup %199  ;;  %v129_v44 = vmul.f32 %v198_v41, %v107_v38  ;;  %vm135_vm2 = vweird.f32 %v198_v41 }
 0x12c   :  { %v109_v45 = vmul.f32 %v200_v43, %v105_v39  ;;  %201 = vrsqrt.f32 %v106_v42  ;;  %vm115_vm0 = vweird.f32 %v200_v43  ;;  %vm136_vm6 = vmor %vm134_vm1, %vm135_vm2  ;;  %vm124_vm7 = vweird.f32 %v106_v42 }
 0x12d   :  { %v130_v46 = vmul.f32 %v198_v41, %v129_v44  ;;  %vm116_vm5 = vmor %vm114_vm3, %vm115_vm0 }
 0x12e   :  { %v110_v47 = vmul.f32 %v200_v43, %v109_v45 }
 0x12f   :  { %v131_v49 = vmul.f32 0.5, %v130_v46 }
 0x130   :  { %v111_v48 = vmul.f32 0.5, %v110_v47 }
 0x131   :  { %v132_v53 = vsub.f32 1.5, %v131_v49 }
 0x132   :  { %v202_v50 = vpop.eup %201  ;;  %v112_v51 = vsub.f32 1.5, %v111_v48 }
 0x133   :  { %v119_v52 = vmul.f32 %v202_v50, %v106_v42  ;;  %v133_v57 = vmul.f32 %v198_v41, %v132_v53  ;;  %vm125_vm4 = vweird.f32 %v202_v50 }
 0x134   :  { %v113_v55 = vmul.f32 %v200_v43, %v112_v51  ;;  %vm126_vm8 = vmor %vm124_vm7, %vm125_vm4 }
 0x135   :  { %v120_v54 = vmul.f32 %v202_v50, %v119_v52  ;;  %v137_v62 = vsel %vm136_vm6, %v198_v41, %v133_v57 }
 0x136   :  { %v117_v59 = vsel %vm116_vm5, %v200_v43, %v113_v55  ;;  %v140_v1 = vmul.f32 %v137_v62, %v92_v30 }
 0x137   :  { %v121_v56 = vmul.f32 0.5, %v120_v54  ;;  %v138_v63 = vmul.f32 %v117_v59, %v87_v29 }
 0x139   :  { %v122_v58 = vsub.f32 1.5, %v121_v56 }
 0x13b   :  { %v123_v60 = vmul.f32 %v202_v50, %v122_v58 }
 0x13d   :  { %v127_v61 = vsel %vm126_vm8, %v202_v50, %v123_v60 }
 0x13e   :  { %v139_v0 = vmul.f32 %v127_v61, %v89_v33 }
 0x140   :  { %v142_v2 = vadd.f32 %v139_v0, %v138_v63 }
 0x142   :  { %v143_v3 = vadd.f32 %v142_v2, %v140_v1 }
 0x144   :  { %v150_v4 = vmul.f32 %v143_v3, %v143_v3 }
 0x146   :  { %151 = vadd.xlane.f32.xlu1 %v150_v4 }
 0x1b9   :  { %v152_v5 = vpop.xlane.xlu1 %151 }
 0x1ba   :  { %v153_v6 = vadd.f32 1e-12, %v152_v5 }
 0x1bc   :  { %203 = vrsqrt.f32 %v153_v6  ;;  %vm160_vm10 = vweird.f32 %v153_v6 }
 0x1c2   :  { %v204_v7 = vpop.eup %203 }
 0x1c3   :  { %v155_v8 = vmul.f32 %v204_v7, %v153_v6  ;;  %vm161_vm9 = vweird.f32 %v204_v7 }
 0x1c4   :  { %vm162_vm11 = vmor %vm160_vm10, %vm161_vm9 }
 0x1c5   :  { %v156_v9 = vmul.f32 %v204_v7, %v155_v8 }
 0x1c7   :  { %v157_v10 = vmul.f32 0.5, %v156_v9 }
 0x1c9   :  { %v158_v11 = vsub.f32 1.5, %v157_v10 }
 0x1cb   :  { %v159_v12 = vmul.f32 %v204_v7, %v158_v11 }
 0x1cd   :  { %v163_v13 = vsel %vm162_vm11, %v204_v7, %v159_v12 }
 0x1ce   :  { %v164_v14 = vmul.f32 %v163_v13, %v143_v3 }
 0x1d0   :  { %165 = vst [vmem:[#allocation8] sm:$0xff] %v164_v14 }
 0x1d1   :  { %176 = dma.vmem_to_hbm [thread:$0]  %s172_s1, 128, %s174_s23, [#allocation5]  }
 0x1d2   :  { %281 = dma.done.wait [#allocation5], 128  }
 0x1d3   :  { %282 = vsyncadd [#allocation5], 4294967168 }
 0x1d4   :  { %181 = vsyncpa [#allocation4], 1 }
 0x1d5   :  { %182 = vsyncpa [#allocation7], 1 }
 0x1d6   :  { %183 = vsyncpa [#allocation5], 1 }

</bundles_post_ra>
